<compile_context>
chip_gen: v7x
topology: tpu7x:2x2x1
jax: 0.10.0
libtpu: 0.0.40
codegen_flags: <defaults>
</compile_context>

<pallas_src>
from functools import partial

import jax
import jax.numpy as jnp
from jax import lax
from jax.experimental import pallas as pl
from jax.experimental.pallas import tpu as pltpu

LSTM_NUM_OF_LAYERS = 1

_VMEM = pl.BlockSpec(memory_space=pltpu.VMEM)


# ---------------------------------------------------------------------------
# Small helpers (host side)
# ---------------------------------------------------------------------------
def _round_up(x, m):
    return ((x + m - 1) // m) * m


def _pad_gate_cols(w, H, Hp):
    """(rows, 4H) -> (rows, 4Hp): gate g occupies columns [g*Hp, g*Hp + H)."""
    if Hp == H:
        return w
    rows = w.shape[0]
    pad = jnp.zeros((rows, Hp - H), w.dtype)
    parts = []
    for g in range(4):
        parts.append(w[:, g * H:(g + 1) * H])
        parts.append(pad)
    return jnp.concatenate(parts, axis=1)


def _pick_chunk(T, max_chunk=32):
    """Largest sequence chunk <= max_chunk that divides T and keeps blocks
    (8,128)/(16,128)-tileable.  Falls back to T (fully resident) if none."""
    if T <= max_chunk:
        return T
    for c in range(max_chunk, 0, -1):
        if c % 16 == 0 and T % c == 0:
            return c
    return T


def _seq_vmem_limit(chunk, In, Hp):
    need = 0
    need += 2 * chunk * In * 2               # x chunk (bf16, double-buffered)
    need += 2 * chunk * Hp * 4               # hs chunk (f32, double-buffered)
    need += 2 * (In * 4 * Hp * 2)            # W_ih^T (bf16)
    need += 2 * (Hp * 4 * Hp * 4)            # W_hh^T (f32)
    need += 2 * (4 * Hp * 4 + 2 * Hp * 4)    # bias + h0 + c0
    need += 2 * (2 * Hp * 4)                 # packed final state output
    need += 2 * Hp * 4                       # (h, c) carry scratch
    need += chunk * 4 * Hp * 4               # hoisted xproj scratch
    # Explicit limit: never below any platform default (v5e's is 16 MiB),
    # capped at 48 MiB so it also fits v7x's 64 MiB physical VMEM.
    return int(min(48 * 1024 * 1024, max(2 * need + (1 << 20), 32 * 1024 * 1024)))


# ---------------------------------------------------------------------------
# Kernels
# ---------------------------------------------------------------------------
def lstm_step_kernel(x_ref, state_ref, wih_ref, whh_ref, b_ref, out_ref):
    """One LSTM cell step (seq=1, batch=1).

    x_ref     : (1, In)     bf16 -- input
    state_ref : (2, Hp)     f32  -- packed [h_prev ; c_prev] (aliased to out)
    wih_ref   : (In, 4Hp)   bf16 -- padded W_ih^T
    whh_ref   : (Hp, 4Hp)   f32  -- padded W_hh^T
    b_ref     : (1, 4Hp)    f32  -- padded (b_ih + b_hh)
    out_ref   : (2, Hp)     f32  -- packed [h_new ; c_new]
    """
    Hp = out_ref.shape[-1]
    h = state_ref[0:1, :]
    c = state_ref[1:2, :]
    gates = (jnp.dot(x_ref[...], wih_ref[...], preferred_element_type=jnp.float32)
             + jnp.dot(h, whh_ref[...], preferred_element_type=jnp.float32)
             + b_ref[...])
    sig = jax.nn.sigmoid(gates)          # full-row activations: 2 EUP passes
    th = jnp.tanh(gates)
    i_g = sig[:, 0 * Hp:1 * Hp]
    f_g = sig[:, 1 * Hp:2 * Hp]
    g_g = th[:, 2 * Hp:3 * Hp]
    o_g = sig[:, 3 * Hp:4 * Hp]
    c_new = f_g * c + i_g * g_g
    h_new = o_g * jnp.tanh(c_new)
    out_ref[0:1, :] = h_new              # row stores, no concat epilogue
    out_ref[1:2, :] = c_new


def lstm_seq_kernel(x_ref, h0_ref, c0_ref, wih_ref, whh_ref, b_ref,
                    hs_ref, state_ref, carry_ref, xproj_ref):
    """One sequence chunk per grid step; (h, c) carried in VMEM across steps.

    x_ref     : (TC, In)    bf16 -- input chunk
    h0_ref    : (1, Hp)     f32  -- initial hidden state (padded)
    c0_ref    : (1, Hp)     f32  -- initial cell state (padded)
    wih_ref   : (In, 4Hp)   bf16 -- padded W_ih^T (resident; constant index map)
    whh_ref   : (Hp, 4Hp)   f32  -- padded W_hh^T (resident)
    b_ref     : (1, 4Hp)    f32  -- padded (b_ih + b_hh)
    hs_ref    : (TC, Hp)    f32  -- per-step hidden outputs (lane-dense)
    state_ref : (2, Hp)     f32  -- packed final state (written at last step)
    carry_ref : (2, Hp)     f32  -- scratch: (h, c) carry across grid steps
    xproj_ref : (TC, 4Hp)   f32  -- scratch: hoisted input projection + bias
    """
    Hp = carry_ref.shape[-1]
    TC = hs_ref.shape[0]

    @pl.when(pl.program_id(0) == 0)
    def _init():
        carry_ref[0:1, :] = h0_ref[...]
        carry_ref[1:2, :] = c0_ref[...]

    # Hoist the input projection (+ bias) out of the recurrence: one
    # (TC, In) x (In, 4Hp) bf16 MXU matmul per chunk, f32 accumulation.
    xproj_ref[...] = (
        jnp.dot(x_ref[...], wih_ref[...], preferred_element_type=jnp.float32)
        + b_ref[...])

    def step(t, carry):
        h, c = carry                                         # f32 (1, Hp)
        gates = xproj_ref[pl.ds(t, 1), :] + jnp.dot(
            h, whh_ref[...], preferred_element_type=jnp.float32)   # f32 recurrence
        sig = jax.nn.sigmoid(gates)                          # 2 EUP passes total
        th = jnp.tanh(gates)
        i_g = sig[:, 0 * Hp:1 * Hp]                          # lane-aligned slices
        f_g = sig[:, 1 * Hp:2 * Hp]
        g_g = th[:, 2 * Hp:3 * Hp]
        o_g = sig[:, 3 * Hp:4 * Hp]
        c_new = f_g * c + i_g * g_g
        h_new = o_g * jnp.tanh(c_new)
        hs_ref[pl.ds(t, 1), :] = h_new                       # lane-dense row store
        return (h_new, c_new)

    h_T, c_T = lax.fori_loop(0, TC, step,
                             (carry_ref[0:1, :], carry_ref[1:2, :]),
                             unroll=min(TC, 8))

    carry_ref[0:1, :] = h_T
    carry_ref[1:2, :] = c_T

    @pl.when(pl.program_id(0) == pl.num_programs(0) - 1)
    def _finalize():
        state_ref[0:1, :] = h_T
        state_ref[1:2, :] = c_T


# ---------------------------------------------------------------------------
# pallas_call wrappers
# ---------------------------------------------------------------------------
@jax.jit
def lstm_step_pallas(x_bf16, h_row, c_row, wih_p, whh_p, b_p):
    Hp = whh_p.shape[0]
    H = h_row.shape[-1]
    state = jnp.zeros((2, Hp), jnp.float32)
    state = state.at[0:1, :H].set(h_row)
    state = state.at[1:2, :H].set(c_row)
    return pl.pallas_call(
        lstm_step_kernel,
        out_shape=jax.ShapeDtypeStruct((2, Hp), jnp.float32),
        in_specs=[_VMEM] * 5,
        out_specs=_VMEM,
        input_output_aliases={1: 0},       # state updated in place
    )(x_bf16, state, wih_p, whh_p, b_p)


@partial(jax.jit, static_argnames=("chunk",))
def lstm_seq_pallas(x_bf16, h0, c0, wih_p, whh_p, b_p, *, chunk):
    T, In = x_bf16.shape
    Hp = h0.shape[-1]
    n_chunks = T // chunk

    grid_spec = pltpu.PrefetchScalarGridSpec(
        num_scalar_prefetch=0,
        grid=(n_chunks,),
        in_specs=[
            pl.BlockSpec((chunk, In), lambda i: (i, 0)),       # x chunk
            pl.BlockSpec((1, Hp), lambda i: (0, 0)),           # h0
            pl.BlockSpec((1, Hp), lambda i: (0, 0)),           # c0
            pl.BlockSpec((In, 4 * Hp), lambda i: (0, 0)),      # W_ih^T (resident)
            pl.BlockSpec((Hp, 4 * Hp), lambda i: (0, 0)),      # W_hh^T (resident)
            pl.BlockSpec((1, 4 * Hp), lambda i: (0, 0)),       # bias
        ],
        out_specs=(
            pl.BlockSpec((chunk, Hp), lambda i: (i, 0)),       # hs (pipelined)
            pl.BlockSpec((2, Hp), lambda i: (0, 0)),           # final state
        ),
        scratch_shapes=[
            pltpu.VMEM((2, Hp), jnp.float32),                  # (h, c) carry
            pltpu.VMEM((chunk, 4 * Hp), jnp.float32),          # hoisted xproj
        ],
    )

    return pl.pallas_call(
        lstm_seq_kernel,
        out_shape=(
            jax.ShapeDtypeStruct((T, Hp), jnp.float32),
            jax.ShapeDtypeStruct((2, Hp), jnp.float32),
        ),
        grid_spec=grid_spec,
        compiler_params=pltpu.CompilerParams(
            dimension_semantics=("arbitrary",),
            vmem_limit_bytes=_seq_vmem_limit(chunk, In, Hp),
        ),
    )(x_bf16, h0, c0, wih_p, whh_p, b_p)


# ---------------------------------------------------------------------------
# Module port
# ---------------------------------------------------------------------------
class EncoderRNNPallas:
    """JAX/Pallas port of baseline/MSD_Predict.py::EncoderRNN (bidirectional=False)."""

    def __init__(self, input_size, hidden_size, key):
        self.input_size = input_size
        self.hidden_size = hidden_size
        H = hidden_size
        Hp = _round_up(H, 128)        # lane-aligned hidden dim
        self.hidden_pad = Hp

        k = float(1.0 / (H ** 0.5))
        k1, k2, k3, k4 = jax.random.split(key, 4)
        # PyTorch stores weight_ih_l0: (4H, In), weight_hh_l0: (4H, H).
        w_ih = jax.random.uniform(k1, (4 * H, input_size), jnp.float32, -k, k)
        w_hh = jax.random.uniform(k2, (4 * H, H), jnp.float32, -k, k)
        b_ih = jax.random.uniform(k3, (4 * H,), jnp.float32, -k, k)
        b_hh = jax.random.uniform(k4, (4 * H,), jnp.float32, -k, k)

        # Unpadded transposed copies (used by the pure-JAX reference).
        self.wih_t = jnp.transpose(w_ih)                       # (In, 4H) f32
        self.whh_t = jnp.transpose(w_hh)                       # (H, 4H)  f32
        self.b = (b_ih + b_hh).reshape(1, 4 * H)               # (1, 4H)  f32

        # Padded kernel weights: each gate block placed at [g*Hp, g*Hp+H);
        # padded rows/cols/bias are zero, so padded lanes never affect real state.
        self.wih_p = _pad_gate_cols(self.wih_t.astype(jnp.bfloat16), H, Hp)  # (In, 4Hp)
        whh_cols = _pad_gate_cols(self.whh_t, H, Hp)                         # (H, 4Hp)
        self.whh_p = jnp.zeros((Hp, 4 * Hp), jnp.float32).at[:H, :].set(whh_cols)
        self.b_p = _pad_gate_cols(self.b, H, Hp)                             # (1, 4Hp)

        self.hidden = self.initHidden()

    def initHidden(self):
        # Matches the reference module exactly: (2 * num_layers, 1, H) zeros.
        z = jnp.zeros((2 * LSTM_NUM_OF_LAYERS, 1, self.hidden_size), jnp.float32)
        return (z, z)

    def _state_rows(self, hidden):
        # Unidirectional single-layer LSTM uses only layer-0 / direction-0 state;
        # accept either (1,1,H) or the (2,1,H) initHidden shape.
        h0, c0 = hidden
        h2 = jnp.reshape(h0, (-1, self.hidden_size))[:1]
        c2 = jnp.reshape(c0, (-1, self.hidden_size))[:1]
        return h2, c2

    def forward(self, encoder_input, hidden):
        """Single step (seq=1, batch=1) — the reference module's forward()."""
        H = self.hidden_size
        x = jnp.reshape(encoder_input, (1, self.input_size)).astype(jnp.bfloat16)
        h2, c2 = self._state_rows(hidden)
        packed = lstm_step_pallas(x, h2, c2, self.wih_p, self.whh_p, self.b_p)
        h_new = packed[0:1, :H]
        c_new = packed[1:2, :H]
        output = h_new.reshape(1, 1, H)
        hidden_new = (h_new.reshape(1, 1, H), c_new.reshape(1, 1, H))
        self.hidden = hidden_new
        return output, hidden_new

    def forward_sequence(self, inputs, hidden):
        """T steps in one pallas_call: T-chunked grid, weights resident,
        (h, c) carried in VMEM scratch across chunks."""
        H, Hp = self.hidden_size, self.hidden_pad
        x = jnp.reshape(inputs, (-1, self.input_size)).astype(jnp.bfloat16)
        T = x.shape[0]
        chunk = _pick_chunk(T)
        h2, c2 = self._state_rows(hidden)
        h0 = jnp.zeros((1, Hp), jnp.float32).at[:, :H].set(h2)
        c0 = jnp.zeros((1, Hp), jnp.float32).at[:, :H].set(c2)
        hs, state = lstm_seq_pallas(x, h0, c0, self.wih_p, self.whh_p, self.b_p,
                                    chunk=chunk)
        output = hs[:, :H].reshape(T, 1, H)
        hidden_new = (state[0:1, :H].reshape(1, 1, H),
                      state[1:2, :H].reshape(1, 1, H))
        self.hidden = hidden_new
        return output, hidden_new


# ---------------------------------------------------------------------------
# Pure-JAX reference (mirrors the kernel's dtype strategy) for verification
# ---------------------------------------------------------------------------
def lstm_reference(x_seq, h0, c0, wih_t, whh_t, b):
    H = h0.shape[-1]
    xproj = jnp.dot(x_seq.astype(jnp.bfloat16), wih_t.astype(jnp.bfloat16),
                    preferred_element_type=jnp.float32) + b          # (T, 4H)

    def step(carry, xp):
        h, c = carry
        gates = xp[None, :] + jnp.dot(h, whh_t, preferred_element_type=jnp.float32)
        i_g = jax.nn.sigmoid(gates[:, 0 * H:1 * H])
        f_g = jax.nn.sigmoid(gates[:, 1 * H:2 * H])
        g_g = jnp.tanh(gates[:, 2 * H:3 * H])
        o_g = jax.nn.sigmoid(gates[:, 3 * H:4 * H])
        c_new = f_g * c + i_g * g_g
        h_new = o_g * jnp.tanh(c_new)
        return (h_new, c_new), h_new[0]

    (h_T, c_T), hs = lax.scan(step, (h0, c0), xproj)
    return hs, h_T, c_T


if __name__ == "__main__":
    input_size = 32
    hidden_size = 32
    seq_len = 8          # single-chunk path (chunk == T, grid=(1,))
    long_seq_len = 96    # multi-chunk path  (chunk=32, grid=(3,))

    key = jax.random.PRNGKey(0)
    k_param, k_x, k_h, k_c, k_x2 = jax.random.split(key, 5)

    enc = EncoderRNNPallas(input_size, hidden_size, k_param)

    inputs = jax.random.normal(k_x, (seq_len, input_size), jnp.float32)
    hidden0 = (jax.random.normal(k_h, (1, 1, hidden_size), jnp.float32),
               jax.random.normal(k_c, (1, 1, hidden_size), jnp.float32))

    # --- single-step forward (reference module semantics: seq=1, batch=1) ---
    out1, hid1 = enc.forward(inputs[0], hidden0)
    jax.block_until_ready((out1, hid1))
    assert out1.shape == (1, 1, hidden_size)
    assert hid1[0].shape == (1, 1, hidden_size)
    assert hid1[1].shape == (1, 1, hidden_size)

    # --- whole-sequence forward: one pallas_call for all timesteps ----------
    out_seq, hid_seq = enc.forward_sequence(inputs, hidden0)
    jax.block_until_ready((out_seq, hid_seq))
    assert out_seq.shape == (seq_len, 1, hidden_size)

    # --- correctness vs pure-JAX reference (short sequence) -----------------
    h2 = hidden0[0].reshape(1, hidden_size)
    c2 = hidden0[1].reshape(1, hidden_size)
    hs_ref, hT_ref, cT_ref = lstm_reference(inputs, h2, c2,
                                            enc.wih_t, enc.whh_t, enc.b)
    assert jnp.allclose(out_seq[:, 0, :], hs_ref, atol=2e-2, rtol=2e-2)
    assert jnp.allclose(hid_seq[0][0, 0], hT_ref[0], atol=2e-2, rtol=2e-2)
    assert jnp.allclose(hid_seq[1][0, 0], cT_ref[0], atol=2e-2, rtol=2e-2)

    # --- consistency: chained single-step forward matches the seq kernel ----
    hid = hidden0
    outs = []
    for t in range(seq_len):
        o, hid = enc.forward(inputs[t], hid)
        outs.append(o[0])
    outs = jnp.stack(outs)                      # (T, 1, H)
    jax.block_until_ready(outs)
    assert jnp.allclose(outs, out_seq, atol=2e-2, rtol=2e-2)

    # --- long sequence: exercises the T-chunked grid + VMEM-resident carry --
    inputs_long = jax.random.normal(k_x2, (long_seq_len, input_size), jnp.float32)
    out_long, hid_long = enc.forward_sequence(inputs_long, enc.initHidden())
    jax.block_until_ready((out_long, hid_long))
    assert out_long.shape == (long_seq_len, 1, hidden_size)

    z = jnp.zeros((1, hidden_size), jnp.float32)
    hs_ref2, hT_ref2, cT_ref2 = lstm_reference(inputs_long, z, z,
                                               enc.wih_t, enc.whh_t, enc.b)
    assert jnp.allclose(out_long[:, 0, :], hs_ref2, atol=2e-2, rtol=2e-2)
    assert jnp.allclose(hid_long[0][0, 0], hT_ref2[0], atol=2e-2, rtol=2e-2)
    assert jnp.allclose(hid_long[1][0, 0], cT_ref2[0], atol=2e-2, rtol=2e-2)

    print("KERNEL_OK")
</pallas_src>

<mosaic_0001>
module attributes {stable_mosaic.version = 11 : i64} {
  func.func @lstm_step_kernel(%arg0: memref<1x32xbf16, #tpu.memory_space<vmem>>, %arg1: memref<2x128xf32, #tpu.memory_space<vmem>>, %arg2: memref<32x512xbf16, #tpu.memory_space<vmem>>, %arg3: memref<128x512xf32, #tpu.memory_space<vmem>>, %arg4: memref<1x512xf32, #tpu.memory_space<vmem>>, %arg5: memref<2x128xf32, #tpu.memory_space<vmem>>) attributes {dimension_semantics = [], scalar_prefetch = 0 : i64, scratch_operands = 0 : i64, tpu.core_type = #tpu.core_type<tc>} {
    %c0 = arith.constant 0 : index
    %c0_0 = arith.constant 0 : index
    %0 = vector.load %arg1[%c0, %c0_0] : memref<2x128xf32, #tpu.memory_space<vmem>>, vector<1x128xf32>
    %c1 = arith.constant 1 : index
    %c0_1 = arith.constant 0 : index
    %1 = vector.load %arg1[%c1, %c0_1] : memref<2x128xf32, #tpu.memory_space<vmem>>, vector<1x128xf32>
    %c0_2 = arith.constant 0 : index
    %c0_3 = arith.constant 0 : index
    %2 = vector.load %arg0[%c0_2, %c0_3] : memref<1x32xbf16, #tpu.memory_space<vmem>>, vector<1x32xbf16>
    %c0_4 = arith.constant 0 : index
    %c0_5 = arith.constant 0 : index
    %3 = vector.load %arg2[%c0_4, %c0_5] : memref<32x512xbf16, #tpu.memory_space<vmem>>, vector<32x512xbf16>
    %cst = arith.constant dense<0.000000e+00> : vector<1x512xf32>
    %4 = tpu.matmul %2, %3, %cst {dimension_numbers = #tpu.dot_dimension_numbers<[1], [0], [0], [1], [0, 0, 1, 1], [], []>} : vector<1x32xbf16>, vector<32x512xbf16>, vector<1x512xf32> -> vector<1x512xf32>
    %c0_6 = arith.constant 0 : index
    %c0_7 = arith.constant 0 : index
    %5 = vector.load %arg3[%c0_6, %c0_7] : memref<128x512xf32, #tpu.memory_space<vmem>>, vector<128x512xf32>
    %cst_8 = arith.constant dense<0.000000e+00> : vector<1x512xf32>
    %6 = tpu.matmul %0, %5, %cst_8 {dimension_numbers = #tpu.dot_dimension_numbers<[1], [0], [0], [1], [0, 0, 1, 1], [], []>} : vector<1x128xf32>, vector<128x512xf32>, vector<1x512xf32> -> vector<1x512xf32>
    %7 = arith.addf %4, %6 : vector<1x512xf32>
    %c0_9 = arith.constant 0 : index
    %c0_10 = arith.constant 0 : index
    %8 = vector.load %arg4[%c0_9, %c0_10] : memref<1x512xf32, #tpu.memory_space<vmem>>, vector<1x512xf32>
    %9 = arith.addf %7, %8 : vector<1x512xf32>
    %10 = arith.negf %9 : vector<1x512xf32>
    %11 = math.exp %10 : vector<1x512xf32>
    %cst_11 = arith.constant 1.000000e+00 : f32
    %12 = vector.broadcast %cst_11 : f32 to vector<1x512xf32>
    %13 = arith.addf %12, %11 : vector<1x512xf32>
    %14 = arith.divf %12, %13 : vector<1x512xf32>
    %15 = math.tanh %9 : vector<1x512xf32>
    %16 = vector.extract_strided_slice %14 {offsets = [0, 0], sizes = [1, 128], strides = [1, 1]} : vector<1x512xf32> to vector<1x128xf32>
    %17 = vector.extract_strided_slice %14 {offsets = [0, 128], sizes = [1, 128], strides = [1, 1]} : vector<1x512xf32> to vector<1x128xf32>
    %18 = vector.extract_strided_slice %15 {offsets = [0, 256], sizes = [1, 128], strides = [1, 1]} : vector<1x512xf32> to vector<1x128xf32>
    %19 = vector.extract_strided_slice %14 {offsets = [0, 384], sizes = [1, 128], strides = [1, 1]} : vector<1x512xf32> to vector<1x128xf32>
    %20 = arith.mulf %17, %1 : vector<1x128xf32>
    %21 = arith.mulf %16, %18 : vector<1x128xf32>
    %22 = arith.addf %20, %21 : vector<1x128xf32>
    %23 = math.tanh %22 : vector<1x128xf32>
    %24 = arith.mulf %19, %23 : vector<1x128xf32>
    %c0_12 = arith.constant 0 : index
    %c0_13 = arith.constant 0 : index
    %25 = vector.load %arg5[%c0_12, %c0_13] : memref<2x128xf32, #tpu.memory_space<vmem>>, vector<1x128xf32>
    tpu.vector_store %arg5[%c0_12, %c0_13], %24 {strides = array<i32>} : memref<2x128xf32, #tpu.memory_space<vmem>>, vector<1x128xf32>,
    %c1_14 = arith.constant 1 : index
    %c0_15 = arith.constant 0 : index
    %26 = vector.load %arg5[%c1_14, %c0_15] : memref<2x128xf32, #tpu.memory_space<vmem>>, vector<1x128xf32>
    tpu.vector_store %arg5[%c1_14, %c0_15], %22 {strides = array<i32>} : memref<2x128xf32, #tpu.memory_space<vmem>>, vector<1x128xf32>,
    return
  }
}

</mosaic_0001>

<bundles_post_ra>
// kernel: lstm_step_pallas.1
= control target key start
LH: loop header
LB: loop body
LE: loop exit
PB: predicated region body
PF: predicated region fallthrough
CT: control target
= control target key end

     0   :  { %10 = vsyncpa [#allocation3], 0  ;;  %s775_s0 = inlined_call_operand.vmem [shape: bf16[1,32], index: 0, kind: input, shape index: {}]   ;;  %s776_s1 = inlined_call_operand.hbm [shape: f32[2,128], index: 1, kind: input, shape index: {}, may-alias: {1,5}]   ;;  %s777_s2 = inlined_call_operand.hbm [shape: bf16[32,512], index: 2, kind: input, shape index: {}]   ;;  %s778_s3 = inlined_call_operand.hbm [shape: f32[128,512], index: 3, kind: input, shape index: {}]   ;;  %s779_s4 = inlined_call_operand.vmem [shape: f32[1,512], index: 4, kind: input, shape index: {}]   ;;  %s780_s5 = inlined_call_operand.hbm [shape: f32[2,128], index: 5, kind: output, shape index: {}, may-alias: {1,5}]  }
   0x1   :  { %11 = vsyncpa [#allocation6], 0 }
   0x2   :  { %12 = vsyncpa [#allocation4], 0  ;;  %s681_s18 = smov [#allocation5]   ;;  %s587_s22 = scalar_lea.hbm %s777_s2, 1024 }
   0x3   :  { %s30_s19 = sshll.u32 %s681_s18, 4  ;;  %p588_p0 = scmp.ne.s32.totalorder %s777_s2, %s587_s22  ;;  %s31_s19 = int_to_ptr.vmem [resolvable:$true] %s30_s19 }
   0x4   :  { %p591_p1 = scmp.lt.u32.totalorder %s587_s22, %s777_s2 }
   0x6   :  { %p593_p2 = pnand %p591_p1, %p588_p0 }
   0x8   :  { %596 = shalt.err (!%p593_p2)
}
   0x9   :  { %s597_s27 = scalar_lea.vmem %s31_s19, 1024  ;;  %p602_p4 = scmp.lt.s32.totalorder %s31_s19, %s31_s19 }
   0xa   :  { %p598_p3 = scmp.ne.s32.totalorder %s31_s19, %s597_s27  ;;  %p603_p5 = scmp.lt.s32.totalorder %s597_s27, %s597_s27 }
   0xc   :  { %p604_p6 = por %p603_p5, %p602_p4 }
   0xe   :  { %p605_p7 = pnand %p604_p6, %p598_p3 }
  0x10   :  { %608 = shalt.err (!%p605_p7)
}
  0x11   :  { %s682_s28 = smov 256   ;;  %s683_s29 = smov 16  }
  0x12   :  { %36 = dma.hbm_to_vmem [thread:$0]  %s777_s2, 1024, %s31_s19, [#allocation6], %s682_s28, %s682_s28, %s683_s29  }
  0x13   :  { %s684_s7 = smov [#allocation2]   ;;  %s685_s9 = smov [#allocation7]  }
  0x14   :  { %s21_s8 = sshll.u32 %s684_s7, 4  ;;  %s42_s10 = sshll.u32 %s685_s9, 4  ;;  %s22_s8 = int_to_ptr.vmem [resolvable:$true] %s21_s8  ;;  %s43_s10 = int_to_ptr.vmem [resolvable:$true] %s42_s10 }
  0x15   :  { %s609_s13 = scalar_lea.hbm %s776_s1, 32 }
  0x16   :  { %p610_p8 = scmp.ne.s32.totalorder %s776_s1, %s609_s13  ;;  %p613_p9 = scmp.lt.u32.totalorder %s609_s13, %s776_s1 }
  0x18   :  { %p615_p10 = pnand %p613_p9, %p610_p8 }
  0x1a   :  { %618 = shalt.err (!%p615_p10)
}
  0x1b   :  { %s619_s2 = scalar_lea.vmem %s22_s8, 32  ;;  %p624_p12 = scmp.lt.s32.totalorder %s22_s8, %s22_s8 }
  0x1c   :  { %p620_p11 = scmp.ne.s32.totalorder %s22_s8, %s619_s2  ;;  %p625_p13 = scmp.lt.s32.totalorder %s619_s2, %s619_s2 }
  0x1e   :  { %p626_p0 = por %p625_p13, %p624_p12 }
  0x20   :  { %p627_p1 = pnand %p626_p0, %p620_p11 }
  0x22   :  { %630 = shalt.err (!%p627_p1)
}
  0x23   :  { %24 = dma.hbm_to_vmem [thread:$0]  %s776_s1, 32, %s22_s8, [#allocation3]  }
  0x24   :  { %s631_s22 = scalar_lea.hbm %s778_s3, 8192 }
  0x25   :  { %p632_p2 = scmp.ne.s32.totalorder %s778_s3, %s631_s22  ;;  %p635_p3 = scmp.lt.u32.totalorder %s631_s22, %s778_s3 }
  0x27   :  { %p637_p4 = pnand %p635_p3, %p632_p2 }
  0x29   :  { %640 = shalt.err (!%p637_p4)
}
  0x2a   :  { %s641_s27 = scalar_lea.vmem %s43_s10, 8192  ;;  %p646_p6 = scmp.lt.s32.totalorder %s43_s10, %s43_s10 }
  0x2b   :  { %p642_p5 = scmp.ne.s32.totalorder %s43_s10, %s641_s27  ;;  %p647_p7 = scmp.lt.s32.totalorder %s641_s27, %s641_s27 }
  0x2d   :  { %p648_p8 = por %p647_p7, %p646_p6 }
  0x2f   :  { %p649_p9 = pnand %p648_p8, %p642_p5 }
  0x31   :  { %652 = shalt.err (!%p649_p9)
}
  0x32   :  { %s686_s1 = smov 512   ;;  %s687_s28 = smov 32  }
  0x33   :  { %48 = dma.hbm_to_vmem [thread:$0]  %s778_s3, 8192, %s43_s10, [#allocation6], %s686_s1, %s686_s1, %s687_s28  }
  0x34   :  { %675 = dma.done.wait [#allocation3], 32  }
  0x35   :  { %676 = vsyncadd [#allocation3], 4294967264 }
  0x36   :  { %677 = dma.done.wait [#allocation6], 9216  }
  0x37   :  { %678 = vsyncadd [#allocation6], 4294958080  ;;  %v688_v0 = vmov 0.0   ;;  %v73_v1 = vld [vmem:[#allocation7 + $0x8] sm:$0xff]  ;;  %v72_v3 = vld [vmem:[#allocation7] sm:$0xff]  ;;  %vm318_vm0 = vcmask 261120  }
  0x38   :  { %200 = vmatprep.mubr.f32.mxu0 %v688_v0  ;;  %271 = vmatprep.mubr.f32.mxu1 %v688_v0  ;;  %v77_v2 = vld [vmem:[#allocation7 + $0x28] sm:$0xff]  ;;  %v76_v5 = vld [vmem:[#allocation7 + $0x20] sm:$0xff]  ;;  %v75_v12 = vld [vmem:[#allocation7 + $0x18] sm:$0xff] }
  0x39   :  { %v485_v4 = vpack.c.bf16 %v77_v2, %v73_v1  ;;  %v81_v6 = vld [vmem:[#allocation7 + $0x48] sm:$0xff]  ;;  %v487_v8 = vpack.c.bf16 %v76_v5, %v72_v3  ;;  %v80_v10 = vld [vmem:[#allocation7 + $0x40] sm:$0xff]  ;;  %v79_v13 = vld [vmem:[#allocation7 + $0x38] sm:$0xff] }
  0x3a   :  { %v85_v7 = vld [vmem:[#allocation7 + $0x68] sm:$0xff]  ;;  %v84_v11 = vld [vmem:[#allocation7 + $0x60] sm:$0xff]  ;;  %v517_v17 = vpack.c.bf16 %v79_v13, %v75_v12  ;;  %v74_v18 = vld [vmem:[#allocation7 + $0x10] sm:$0xff] }
  0x3b   :  { %v489_v9 = vpack.c.bf16 %v85_v7, %v81_v6  ;;  %486 = vmatprep.subr.bf16.mxu0 %v485_v4  ;;  %v89_v14 = vld [vmem:[#allocation7 + $0x88] sm:$0xff]  ;;  %v491_v16 = vpack.c.bf16 %v84_v11, %v80_v10  ;;  %v78_v19 = vld [vmem:[#allocation7 + $0x30] sm:$0xff]  ;;  %v88_v20 = vld [vmem:[#allocation7 + $0x80] sm:$0xff] }
  0x3c   :  { %v93_v15 = vld [vmem:[#allocation7 + $0xa8] sm:$0xff]  ;;  %488 = vmatpush1.bf16.msra.mxu0 %v487_v8  ;;  %v519_v22 = vpack.c.bf16 %v78_v19, %v74_v18  ;;  %v92_v23 = vld [vmem:[#allocation7 + $0xa0] sm:$0xff]  ;;  %v83_v24 = vld [vmem:[#allocation7 + $0x58] sm:$0xff]  ;;  %518 = vmatprep.subr.bf16.mxu1 %v517_v17 }
  0x3d   :  { %490 = vmatprep.subr.bf16.mxu0 %v489_v9  ;;  %v493_v21 = vpack.c.bf16 %v93_v15, %v89_v14  ;;  %v87_v25 = vld [vmem:[#allocation7 + $0x78] sm:$0xff]  ;;  %v97_v27 = vld [vmem:[#allocation7 + $0xc8] sm:$0xff]  ;;  %v82_v29 = vld [vmem:[#allocation7 + $0x50] sm:$0xff]  ;;  %v495_v31 = vpack.c.bf16 %v92_v23, %v88_v20 }
  0x3e   :  { %v521_v26 = vpack.c.bf16 %v87_v25, %v83_v24  ;;  %v101_v28 = vld [vmem:[#allocation7 + $0xe8] sm:$0xff]  ;;  %520 = vmatpush1.bf16.msra.mxu1 %v519_v22  ;;  %v86_v30 = vld [vmem:[#allocation7 + $0x70] sm:$0xff]  ;;  %v96_v33 = vld [vmem:[#allocation7 + $0xc0] sm:$0xff] }
  0x3f   :  { %v523_v32 = vpack.c.bf16 %v86_v30, %v82_v29  ;;  %v91_v34 = vld [vmem:[#allocation7 + $0x98] sm:$0xff]  ;;  %v497_v36 = vpack.c.bf16 %v101_v28, %v97_v27  ;;  %v100_v37 = vld [vmem:[#allocation7 + $0xe0] sm:$0xff]  ;;  %v90_v39 = vld [vmem:[#allocation7 + $0x90] sm:$0xff] }
  0x40   :  { %492 = vmatpush1.bf16.msra.mxu0 %v491_v16  ;;  %522 = vmatprep.subr.bf16.mxu1 %v521_v26  ;;  %v95_v35 = vld [vmem:[#allocation7 + $0xb8] sm:$0xff]  ;;  %v94_v40 = vld [vmem:[#allocation7 + $0xb0] sm:$0xff]  ;;  %v105_v41 = vld [vmem:[#allocation7 + $0x108] sm:$0xff]  ;;  %v499_v46 = vpack.c.bf16 %v100_v37, %v96_v33 }
  0x41   :  { %494 = vmatprep.subr.bf16.mxu0 %v493_v21  ;;  %v525_v38 = vpack.c.bf16 %v95_v35, %v91_v34  ;;  %v109_v42 = vld [vmem:[#allocation7 + $0x128] sm:$0xff]  ;;  %v99_v43 = vld [vmem:[#allocation7 + $0xd8] sm:$0xff]  ;;  %v527_v44 = vpack.c.bf16 %v94_v40, %v90_v39  ;;  %v104_v47 = vld [vmem:[#allocation7 + $0x100] sm:$0xff]  ;;  %v689_v40 = vmov 0  }
  0x42   :  { %524 = vmatpush1.bf16.msra.mxu1 %v523_v32  ;;  %v103_v45 = vld [vmem:[#allocation7 + $0xf8] sm:$0xff]  ;;  %v98_v49 = vld [vmem:[#allocation7 + $0xd0] sm:$0xff]  ;;  %v501_v51 = vpack.c.bf16 %v109_v42, %v105_v41  ;;  %v108_v52 = vld [vmem:[#allocation7 + $0x120] sm:$0xff] }
  0x43   :  { %526 = vmatprep.subr.bf16.mxu1 %v525_v38  ;;  %v529_v48 = vpack.c.bf16 %v103_v45, %v99_v43  ;;  %v102_v50 = vld [vmem:[#allocation7 + $0xf0] sm:$0xff]  ;;  %v107_v53 = vld [vmem:[#allocation7 + $0x118] sm:$0xff]  ;;  %v113_v55 = vld [vmem:[#allocation7 + $0x148] sm:$0xff]  ;;  %v503_v58 = vpack.c.bf16 %v108_v52, %v104_v47 }
  0x44   :  { %496 = vmatpush1.bf16.msra.mxu0 %v495_v31  ;;  %v111_v54 = vld [vmem:[#allocation7 + $0x138] sm:$0xff]  ;;  %v117_v56 = vld [vmem:[#allocation7 + $0x168] sm:$0xff]  ;;  %v531_v57 = vpack.c.bf16 %v102_v50, %v98_v49  ;;  %v112_v59 = vld [vmem:[#allocation7 + $0x140] sm:$0xff] }
  0x45   :  { %498 = vmatprep.subr.bf16.mxu0 %v497_v36  ;;  %v533_v60 = vpack.c.bf16 %v111_v54, %v107_v53  ;;  %v106_v61 = vld [vmem:[#allocation7 + $0x110] sm:$0xff]  ;;  %v505_v63 = vpack.c.bf16 %v117_v56, %v113_v55  ;;  %v116_v0 = vld [vmem:[#allocation7 + $0x160] sm:$0xff]  ;;  %v115_v1 = vld [vmem:[#allocation7 + $0x158] sm:$0xff] }
  0x46   :  { %528 = vmatpush1.bf16.msra.mxu1 %v527_v44  ;;  %v110_v62 = vld [vmem:[#allocation7 + $0x130] sm:$0xff]  ;;  %v119_v2 = vld [vmem:[#allocation7 + $0x178] sm:$0xff]  ;;  %v121_v3 = vld [vmem:[#allocation7 + $0x188] sm:$0xff]  ;;  %v507_v8 = vpack.c.bf16 %v116_v0, %v112_v59  ;;  %v406_v44 = vlaneseq }
  0x47   :  { %530 = vmatprep.subr.bf16.mxu1 %v529_v48  ;;  %v125_v4 = vld [vmem:[#allocation7 + $0x1a8] sm:$0xff]  ;;  %v535_v5 = vpack.c.bf16 %v110_v62, %v106_v61  ;;  %v120_v6 = vld [vmem:[#allocation7 + $0x180] sm:$0xff]  ;;  %v114_v7 = vld [vmem:[#allocation7 + $0x150] sm:$0xff]  ;;  %v537_v9 = vpack.c.bf16 %v119_v2, %v115_v1 }
  0x48   :  { %500 = vmatpush1.bf16.msra.mxu0 %v499_v46  ;;  %v118_v10 = vld [vmem:[#allocation7 + $0x170] sm:$0xff]  ;;  %v509_v11 = vpack.c.bf16 %v125_v4, %v121_v3  ;;  %v124_v12 = vld [vmem:[#allocation7 + $0x1a0] sm:$0xff]  ;;  %v123_v13 = vld [vmem:[#allocation7 + $0x198] sm:$0xff]  ;;  %v407_v45 = vshrl.u32 %v406_v44, 7 }
  0x49   :  { %502 = vmatprep.subr.bf16.mxu0 %v501_v51  ;;  %v127_v14 = vld [vmem:[#allocation7 + $0x1b8] sm:$0xff]  ;;  %v129_v15 = vld [vmem:[#allocation7 + $0x1c8] sm:$0xff]  ;;  %v539_v17 = vpack.c.bf16 %v118_v10, %v114_v7  ;;  %v128_v18 = vld [vmem:[#allocation7 + $0x1c0] sm:$0xff]  ;;  %v511_v20 = vpack.c.bf16 %v124_v12, %v120_v6 }
  0x4a   :  { %532 = vmatpush1.bf16.msra.mxu1 %v531_v57  ;;  %v133_v16 = vld [vmem:[#allocation7 + $0x1e8] sm:$0xff]  ;;  %v122_v19 = vld [vmem:[#allocation7 + $0x190] sm:$0xff]  ;;  %v541_v21 = vpack.c.bf16 %v127_v14, %v123_v13  ;;  %v132_v24 = vld [vmem:[#allocation7 + $0x1e0] sm:$0xff]  ;;  %v408_v48 = vsub.s32 0, %v407_v45  ;;  %v412_v51 = vsub.s32 1, %v407_v45 }
  0x4b   :  { %534 = vmatprep.subr.bf16.mxu1 %v533_v60  ;;  %v126_v22 = vld [vmem:[#allocation7 + $0x1b0] sm:$0xff]  ;;  %v513_v23 = vpack.c.bf16 %v133_v16, %v129_v15  ;;  %v131_v25 = vld [vmem:[#allocation7 + $0x1d8] sm:$0xff]  ;;  %v515_v28 = vpack.c.bf16 %v132_v24, %v128_v18  ;;  %v420_v60 = vsub.s32 3, %v407_v45 }
  0x4c   :  { %504 = vmatpush1.bf16.msra.mxu0 %v503_v58  ;;  %v135_v26 = vld [vmem:[#allocation7 + $0x1f8] sm:$0xff]  ;;  %v543_v27 = vpack.c.bf16 %v126_v22, %v122_v19  ;;  %v130_v30 = vld [vmem:[#allocation7 + $0x1d0] sm:$0xff] }
  0x4d   :  { %506 = vmatprep.subr.bf16.mxu0 %v505_v63  ;;  %v545_v29 = vpack.c.bf16 %v135_v26, %v131_v25  ;;  %v134_v31 = vld [vmem:[#allocation7 + $0x1f0] sm:$0xff]  ;;  %v61_v34 = vld [vmem:[#allocation2] sm:$0x1]  ;;  %v565_v38 = vld [vmem:[#allocation5 + $0x8] ss:$16 sps:$4 sm:$0xff]  }
  0x4e   :  { %536 = vmatpush1.bf16.msra.mxu1 %v535_v5  ;;  %v561_v32 = vld [vmem:[#allocation5 + $0x4] ss:$16 sps:$4 sm:$0xff]   ;;  %v547_v33 = vpack.c.bf16 %v134_v31, %v130_v30  ;;  %v559_v35 = vld [vmem:[#allocation5] ss:$16 sps:$4 sm:$0xff]   ;;  %v567_v37 = vld [vmem:[#allocation5 + $0xc] ss:$16 sps:$4 sm:$0xff]  }
  0x4f   :  { %538 = vmatprep.subr.bf16.mxu1 %v537_v9  ;;  %v564_v36 = vld [vmem:[#allocation5 + $0x24] ss:$16 sps:$4 sm:$0xff]   ;;  %v562_v39 = vld [vmem:[#allocation5 + $0x20] ss:$16 sps:$4 sm:$0xff]   ;;  %v570_v41 = vld [vmem:[#allocation5 + $0x2c] ss:$16 sps:$4 sm:$0xff]  }
  0x50   :  { %508 = vmatpush1.bf16.msra.mxu0 %v507_v8  ;;  %v568_v42 = vld [vmem:[#allocation5 + $0x28] ss:$16 sps:$4 sm:$0xff]   ;;  %v63_v43 = vld [vmem:[%s775_s0] sm:$0x1]  ;;  %v416_v9 = vsub.s32 2, %v407_v45  ;;  %s690_s0 = smov [#allocation8]  }
  0x51   :  { %510 = vmatprep.subr.bf16.mxu0 %v509_v11  ;;  %v404_v50 = vld [vmem:[%s779_s4] sm:$0xf]  ;;  %s462_s4 = sshll.u32 %s690_s0, 4  ;;  %s463_s4 = int_to_ptr.vmem [resolvable:$true] %s462_s4 }
  0x52   :  { %540 = vmatpush1.bf16.msra.mxu1 %v539_v17  ;;  %v409_v53 = vrot.slane %v404_v50, %v408_v48  ;;  %v413_v55 = vrot.slane %v404_v50, %v412_v51  ;;  %v421_v7 = vrot.slane %v404_v50, %v420_v60  ;;  %v417_v11 = vrot.slane %v404_v50, %v416_v9  ;;  %s653_s9 = scalar_lea.vmem %s463_s4, 32  ;;  %p658_p11 = scmp.lt.s32.totalorder %s463_s4, %s463_s4 }
  0x53   :  { %542 = vmatprep.subr.bf16.mxu1 %v541_v21  ;;  %p654_p10 = scmp.ne.s32.totalorder %s463_s4, %s653_s9  ;;  %p659_p12 = scmp.lt.s32.totalorder %s653_s9, %s653_s9 }
  0x54   :  { %512 = vmatpush1.bf16.msra.mxu0 %v511_v20  ;;  %v62_v20 = vld [vmem:[#allocation2 + $0x1] sm:$0x1] }
  0x55   :  { %514 = vmatprep.subr.bf16.mxu0 %v513_v23  ;;  %p660_p13 = por %p659_p12, %p658_p11 }
  0x56   :  { %544 = vmatpush1.bf16.msra.mxu1 %v543_v27 }
  0x57   :  { %546 = vmatprep.subr.bf16.mxu1 %v545_v29  ;;  %p661_p0 = pnand %p660_p13, %p654_p10 }
  0x58   :  { %516 = vmatpush1.bf16.msra.mxu0 %v515_v28 }
  0x59   :  { %322 = vmatprep.subr.bf16.mxu0 %v561_v32 }
  0x5a   :  { %548 = vmatpush1.bf16.msra.mxu1 %v547_v33 }
  0x5b   :  { %201 = vmatmul.mubr.f32.vlgmr.msra.gmra.mrb[0].mxu0 %v61_v34  ;;  %363 = vmatprep.subr.bf16.mxu1 %v567_v37 }
  0x5c   :  { %323 = vmatpush1.bf16.msra.mxu0 %v559_v35  ;;  %354 = vmatprep.mubr.bf16.mxu0 %v689_v40 }
  0x5d   :  { %324 = vmatprep.subr.bf16.mxu0 %v564_v36  ;;  %272 = vmatmul.mubr.f32.vlgmr.msra.gmra.mrb[0].mxu1 %v61_v34 }
  0x5e   :  { %364 = vmatpush1.bf16.msra.mxu1 %v565_v38  ;;  %395 = vmatprep.mubr.bf16.mxu1 %v689_v40 }
  0x5f   :  { %365 = vmatprep.subr.bf16.mxu1 %v570_v41 }
  0x60   :  { %325 = vmatpush1.bf16.msra.mxu0 %v562_v39 }
  0x62   :  { %366 = vmatpush1.bf16.msra.mxu1 %v568_v42 }
  0x63   :  { %480 = vmatmul.mubr.msk.bf16.vlgmr.msra.gmra.mrb[4].mxu0 %vm318_vm0, %v63_v43 }
  0x65   :  { %481 = vmatmul.mubr.msk.bf16.vlgmr.msra.gmra.mrb[4].mxu1 %vm318_vm0, %v63_v43 }
 0x12e   :  { %v202_v46 = vpop.f32.mrb[0].mxu0 }
 0x12f   :  { %v204_v47 = vpop.f32.mrb[1].mxu0 }
 0x130   :  { %v273_v49 = vpop.f32.mrb[0].mxu1 }
 0x131   :  { %v275_v52 = vpop.f32.mrb[1].mxu1 }
 0x136   :  { %v356_v54 = vpop.f32.mrb[4].mxu0 }
 0x137   :  { %v357_v56 = vadd.f32 %v356_v54, %v202_v46  ;;  %v358_v57 = vpop.f32.mrb[5].mxu0 }
 0x138   :  { %v359_v58 = vadd.f32 %v358_v57, %v204_v47  ;;  %v360_v59 = vpop.f32.mrb[6].mxu0  ;;  %v397_v63 = vpop.f32.mrb[4].mxu1 }
 0x139   :  { %v426_v61 = vadd.f32 %v409_v53, %v357_v56  ;;  %v361_v62 = vpop.f32.mrb[7].mxu0  ;;  %v398_v1 = vadd.f32 %v397_v63, %v273_v49  ;;  %v399_v2 = vpop.f32.mrb[5].mxu1 }
 0x13a   :  { %v427_v0 = vadd.f32 %v413_v55, %v359_v58  ;;  %v400_v4 = vadd.f32 %v399_v2, %v275_v52  ;;  %v401_v5 = vpop.f32.mrb[6].mxu1 }
 0x13b   :  { %v482_v3 = vmul.f32 -1.442695, %v426_v61  ;;  %v402_v8 = vpop.f32.mrb[7].mxu1  ;;  %v428_v13 = vadd.f32 %v417_v11, %v398_v1 }
 0x13c   :  { %v483_v6 = vmul.f32 -1.442695, %v427_v0  ;;  %v429_v10 = vadd.f32 %v421_v7, %v400_v4 }
 0x13d   :  { %571 = vpow2.f32 %v482_v3 }
 0x13e   :  { %573 = vpow2.f32 %v483_v6  ;;  %v484_v12 = vmul.f32 -1.442695, %v429_v10 }
 0x140   :  { %575 = vpow2.f32 %v484_v12 }
 0x141   :  { %577 = vtanh.f32 %v428_v13 }
 0x147   :  { %v572_v14 = vpop.eup %571 }
 0x148   :  { %v574_v15 = vpop.eup %573  ;;  %v439_v16 = vadd.f32 1.0, %v572_v14 }
 0x149   :  { %v440_v17 = vadd.f32 1.0, %v574_v15 }
 0x14a   :  { %579 = vrcp.f32 %v439_v16  ;;  %v576_v18 = vpop.eup %575 }
 0x14b   :  { %581 = vrcp.f32 %v440_v17  ;;  %v578_v19 = vpop.eup %577  ;;  %v441_v23 = vadd.f32 1.0, %v576_v18 }
 0x14d   :  { %583 = vrcp.f32 %v441_v23 }
 0x154   :  { %v580_v21 = vpop.eup %579 }
 0x155   :  { %v582_v22 = vpop.eup %581  ;;  %v450_v24 = vmul.f32 %v580_v21, %v578_v19 }
 0x156   :  { %v449_v25 = vmul.f32 %v582_v22, %v62_v20 }
 0x157   :  { %v584_v27 = vpop.eup %583 }
 0x158   :  { %v451_v26 = vadd.f32 %v450_v24, %v449_v25 }
 0x15a   :  { %585 = vtanh.f32 %v451_v26  ;;  %455 = vst [vmem:[#allocation8 + $0x1] sm:$0x1] %v451_v26 }
 0x164   :  { %v586_v28 = vpop.eup %585 }
 0x165   :  { %v453_v29 = vmul.f32 %v586_v28, %v584_v27 }
 0x167   :  { %454 = vst [vmem:[#allocation8] sm:$0x1] %v453_v29 }
 0x168   :  { %664 = shalt.err (!%p661_p0)
}
 0x169   :  { %s665_s12 = scalar_lea.hbm %s780_s5, 32 }
 0x16a   :  { %p666_p1 = scmp.ne.s32.totalorder %s780_s5, %s665_s12  ;;  %p669_p2 = scmp.lt.u32.totalorder %s665_s12, %s780_s5 }
 0x16c   :  { %p671_p3 = pnand %p669_p2, %p666_p1 }
 0x16e   :  { %674 = shalt.err (!%p671_p3)
}
 0x16f   :  { %465 = dma.vmem_to_hbm [thread:$0]  %s463_s4, 32, %s780_s5, [#allocation4]  }
 0x170   :  { %679 = dma.done.wait [#allocation4], 32  }
 0x171   :  { %680 = vsyncadd [#allocation4], 4294967264 }
 0x172   :  { %469 = vsyncpa [#allocation3], 1 }
 0x173   :  { %470 = vsyncpa [#allocation6], 1 }
 0x174   :  { %471 = vsyncpa [#allocation4], 1 }

</bundles_post_ra>
